<compile_context>
chip_gen: v5e
topology: v5e:2x2
jax: 0.10.0
libtpu: 0.0.40
codegen_flags: <defaults>
</compile_context>

<pallas_src>
import functools

import jax
import jax.numpy as jnp
from jax.experimental import pallas as pl
from jax.experimental.pallas import tpu as pltpu


# ---------------------------------------------------------------------------
# Pass 1: per-batch-block partial moments (parallel over B, reduced over L)
# ---------------------------------------------------------------------------
def _stats_kernel(x_ref, psum_ref, pgram_ref, *, bt):
    """Accumulate sum(x) and x @ x^T for this batch block across the L axis.

    Outputs are indexed only by the (parallel) batch-block grid axis, so they
    stay resident in VMEM across the (arbitrary) L axis and act as per-block
    accumulators (no shared scratch -> both TensorCores usable on v7x).
    """
    @pl.when(pl.program_id(1) == 0)
    def _():
        psum_ref[...] = jnp.zeros_like(psum_ref)
        pgram_ref[...] = jnp.zeros_like(pgram_ref)

    s = None
    g = None
    for b in range(bt):                               # bt is a static constant
        xb = x_ref[b].astype(jnp.float32)             # (C, tile_l)
        sb = jnp.sum(xb, axis=-1, keepdims=True)      # (C, 1)
        gb = jax.lax.dot_general(                     # xb @ xb^T, no transpose
            xb, xb, dimension_numbers=(((1,), (1,)), ((), ())),
            preferred_element_type=jnp.float32)       # Gram always f32
        s = sb if s is None else s + sb
        g = gb if g is None else g + gb
    psum_ref[0] += s
    pgram_ref[0] += g


# ---------------------------------------------------------------------------
# Pass 2: o = wm_scaled @ x - bias  (mean / inv_std already folded into wm)
# ---------------------------------------------------------------------------
def _whiten_kernel(x_ref, wms_ref, bias_ref, o_ref, *, bt, mm_dtype):
    wms = wms_ref[...]                                # (C, C)
    bias = bias_ref[...]                              # (C, 1) f32
    if mm_dtype is not None:
        wms = wms.astype(mm_dtype)
    for b in range(bt):
        xb = x_ref[b]                                 # (C, tile_l), X.dtype
        if mm_dtype is not None:
            if xb.dtype != mm_dtype:
                xb = xb.astype(mm_dtype)              # bf16 input: no f32 round trip
        else:
            xb = xb.astype(jnp.float32)
        xn = jnp.dot(wms, xb, preferred_element_type=jnp.float32) - bias
        o_ref[b] = xn.astype(o_ref.dtype)


# ---------------------------------------------------------------------------
# Tiny finalize (CxC only) in plain JAX
# ---------------------------------------------------------------------------
def _finalize(psum, pgram, *, m, T, eps, eps_bn):
    """Combine partial moments; sigma + Newton-Schulz; fold mean/istd into wm."""
    C = pgram.shape[-1]
    total = jnp.sum(psum, axis=0)                     # (C, 1)
    gram = jnp.sum(pgram, axis=0)                     # (C, C) = x @ x^T
    mean = total / m                                  # (C, 1)
    cov = gram - m * (mean @ mean.T)                  # xc @ xc^T
    eye = jnp.eye(C, dtype=jnp.float32)
    denom = max(m - 1, 1)                             # guard m == 1
    var = jnp.maximum(jnp.diagonal(cov)[:, None], 0.0) / denom
    std = jnp.sqrt(var) + eps_bn                      # unbiased (torch .std())
    istd = 1.0 / std                                  # (C, 1)
    sigma = eps * eye + (cov * (istd @ istd.T)) * (1.0 / m)
    trace = jnp.trace(sigma)
    sigma_n = sigma / trace
    P = eye
    for _ in range(T):                                # Newton-Schulz, tiny CxC
        P = 1.5 * P - 0.5 * (P @ P @ P @ sigma_n)
    wm = P * jax.lax.rsqrt(trace)
    wm_scaled = wm * istd[:, 0][None, :]              # wm_scaled[i,j]=wm[i,j]*istd[j]
    bias = wm_scaled @ mean                           # (C, 1)
    return wm_scaled, bias


# ---------------------------------------------------------------------------
# Blocking / VMEM helpers (generation aware)
# ---------------------------------------------------------------------------
def _vmem_capacity_bytes():
    try:
        return int(pltpu.get_tpu_info().vmem_capacity_bytes)
    except Exception:
        return 64 * 1024 * 1024                       # conservative (v7x-sized)


def _choose_blocking(B, C, L, itemsize, target_bytes):
    """Pick (Bt, tile_l) so a (Bt, C, tile_l) block is roughly target_bytes."""
    row_bytes = max(1, C * itemsize)
    max_l = (min(L, max(128, target_bytes // row_bytes)) // 128) * 128
    tile_l = None
    t = max_l
    while t >= 128:                                   # lane-aligned divisor of L
        if L % t == 0:
            tile_l = t
            break
        t -= 128
    if tile_l is None:
        tile_l = L                                    # small / unaligned L: full L
    n_l = L // tile_l
    Bt = 1
    if tile_l == L:                                   # short L: block the batch axis
        blk = C * L * itemsize
        want = max(1, target_bytes // max(1, blk))
        if B * n_l >= 4:
            want = min(want, max(1, (B * n_l) // 4))  # keep >= 4 grid steps
        for cand in range(min(B, int(want)), 0, -1):
            if B % cand == 0:
                Bt = cand
                break
    return Bt, tile_l


# ---------------------------------------------------------------------------
# Wrapper
# ---------------------------------------------------------------------------
def coritn_sigma_single(X, *, T=5, eps=1e-3, eps_bn=1e-5,
                        matmul_dtype=None, target_block_bytes=None):
    """Training-mode forward of CorItNSigma_Single for X of shape (B, C, *spatial)."""
    orig_shape = X.shape
    B, C = X.shape[0], X.shape[1]
    if X.ndim > 3:
        X3 = X.reshape(B, C, -1)                      # merge trailing dims (metadata)
    elif X.ndim == 3:
        X3 = X
    else:
        X3 = X.reshape(B, C, 1)
    L = X3.shape[2]
    m = B * L
    itemsize = jnp.dtype(X.dtype).itemsize

    cap = _vmem_capacity_bytes()
    if target_block_bytes is None:                    # ~4 MiB on v7x, ~8 MiB v5e/v6e
        target_block_bytes = int(max(1 << 20, min(8 << 20, cap // 16)))

    # Pad L to a multiple of 128 only when a full-L fallback block would be big.
    pad = 0
    Lp = L
    if L % 128 != 0 and C * L * itemsize > cap // 8:
        pad = (-L) % 128
        X3 = jnp.pad(X3, ((0, 0), (0, 0), (0, pad)))  # zeros: no effect on sum/Gram
        Lp = L + pad

    Bt, tile_l = _choose_blocking(B, C, Lp, itemsize, target_block_bytes)
    nb, nl = B // Bt, Lp // tile_l
    grid = (nb, nl)

    block_in = Bt * C * tile_l * itemsize
    block_f32 = Bt * C * tile_l * 4
    need = 4 * block_in + 3 * block_f32 + 16 * C * C * 4 + (2 << 20)
    vmem_limit = int(max(32 << 20, min(cap - (16 << 20), need)))

    x_spec = pl.BlockSpec((Bt, C, tile_l), lambda b, l: (b, 0, l))

    # ---- Pass 1: per-batch-block partial sum / Gram ---------------------------
    psum, pgram = pl.pallas_call(
        functools.partial(_stats_kernel, bt=Bt),
        out_shape=(jax.ShapeDtypeStruct((nb, C, 1), jnp.float32),
                   jax.ShapeDtypeStruct((nb, C, C), jnp.float32)),
        grid_spec=pltpu.PrefetchScalarGridSpec(
            num_scalar_prefetch=0,
            grid=grid,
            in_specs=[x_spec],
            out_specs=(pl.BlockSpec((1, C, 1), lambda b, l: (b, 0, 0)),
                       pl.BlockSpec((1, C, C), lambda b, l: (b, 0, 0)))),
        compiler_params=pltpu.CompilerParams(
            dimension_semantics=("parallel", "arbitrary"),
            vmem_limit_bytes=vmem_limit),
        cost_estimate=pl.CostEstimate(
            flops=2 * C * C * m,
            transcendentals=0,
            bytes_accessed=C * m * itemsize + nb * (C * C + C) * 4),
    )(X3)

    # ---- Finalize (tiny CxC) in plain JAX --------------------------------------
    wm_scaled, bias = _finalize(psum, pgram, m=m, T=T, eps=eps, eps_bn=eps_bn)

    # ---- Pass 2: whiten, fully parallel, output in X.dtype ----------------------
    out = pl.pallas_call(
        functools.partial(_whiten_kernel, bt=Bt, mm_dtype=matmul_dtype),
        out_shape=jax.ShapeDtypeStruct(X3.shape, X.dtype),
        grid_spec=pltpu.PrefetchScalarGridSpec(
            num_scalar_prefetch=0,
            grid=grid,
            in_specs=[x_spec,
                      pl.BlockSpec((C, C), lambda b, l: (0, 0)),
                      pl.BlockSpec((C, 1), lambda b, l: (0, 0))],
            out_specs=pl.BlockSpec((Bt, C, tile_l), lambda b, l: (b, 0, l))),
        compiler_params=pltpu.CompilerParams(
            dimension_semantics=("parallel", "parallel"),
            vmem_limit_bytes=vmem_limit),
        cost_estimate=pl.CostEstimate(
            flops=2 * C * C * m + C * m,
            transcendentals=0,
            bytes_accessed=2 * C * m * itemsize + (C * C + C) * 4),
    )(X3, wm_scaled, bias)

    if pad:
        out = out[..., :L]
    return out.reshape(orig_shape)


# ---------------------------------------------------------------------------
# Pure-JAX reference mirroring the PyTorch module (training branch)
# ---------------------------------------------------------------------------
def _reference_jax(X, *, T=5, eps=1e-3, eps_bn=1e-5):
    B, C = X.shape[0], X.shape[1]
    perm = (1, 0) + tuple(range(2, X.ndim))
    x = jnp.transpose(X, perm).reshape(C, -1).astype(jnp.float32)
    d, m = x.shape
    mean = jnp.mean(x, axis=-1, keepdims=True)
    xc = x - mean
    std = jnp.std(xc, axis=-1, ddof=1, keepdims=True) + eps_bn
    xcs = xc / std
    eye = jnp.eye(d, dtype=jnp.float32)
    sigma = eps * eye + (1.0 / m) * (xcs @ xcs.T)
    trace_inv = 1.0 / jnp.trace(sigma)
    sigma_n = sigma * trace_inv
    P = eye
    for _ in range(T):
        P = 1.5 * P - 0.5 * (P @ P @ P @ sigma_n)
    wm = P * jnp.sqrt(trace_inv)
    xn = wm @ xcs
    Xn = xn.reshape((C, B) + X.shape[2:])
    return jnp.transpose(Xn, perm).astype(X.dtype)


if __name__ == "__main__":
    key = jax.random.PRNGKey(0)
    k1, k2, k3 = jax.random.split(key, 3)

    # Case 1: 4-D NCHW-like input, default (generation-aware) tiling.
    X1 = jax.random.normal(k1, (2, 4, 16, 16), dtype=jnp.float32) * 2.0 + 0.5
    out1 = jax.block_until_ready(coritn_sigma_single(X1, T=5))
    ref1 = _reference_jax(X1, T=5)
    assert out1.shape == X1.shape and out1.dtype == X1.dtype
    err1 = float(jnp.max(jnp.abs(out1 - ref1)))
    assert err1 < 5e-4, err1

    # Case 2: 3-D (B, C, L), tiny block target to force a (2, 3) grid that
    # exercises the parallel per-batch partials + multi-tile L accumulation.
    X2 = jax.random.normal(k2, (2, 32, 384), dtype=jnp.float32) * 1.5 - 0.25
    out2 = jax.block_until_ready(
        coritn_sigma_single(X2, T=5, target_block_bytes=16 * 1024))
    ref2 = _reference_jax(X2, T=5)
    assert out2.shape == X2.shape and out2.dtype == X2.dtype
    err2 = float(jnp.max(jnp.abs(out2 - ref2)))
    assert err2 < 5e-4, err2

    # Case 3: bf16 input, non-lane-aligned L (batch-blocked full-L tiles),
    # bf16 operands for the pass-2 whitening matmul only.
    X3 = (jax.random.normal(k3, (2, 8, 96), dtype=jnp.float32) * 2.0
          + 0.5).astype(jnp.bfloat16)
    out3 = jax.block_until_ready(
        coritn_sigma_single(X3, T=5, matmul_dtype=jnp.bfloat16))
    ref3 = _reference_jax(X3, T=5)
    assert out3.shape == X3.shape and out3.dtype == X3.dtype
    err3 = float(jnp.max(jnp.abs(out3.astype(jnp.float32) -
                                 ref3.astype(jnp.float32))))
    assert err3 < 1e-1, err3

    print("KERNEL_OK")
</pallas_src>

<mosaic_0001>
module attributes {stable_mosaic.version = 11 : i64} {
  func.func @_stats_kernel(%arg0: i32, %arg1: i32, %arg2: memref<2x4x256xf32, #tpu.memory_space<vmem>>, %arg3: memref<1x4x1xf32, #tpu.memory_space<vmem>>, %arg4: memref<1x4x4xf32, #tpu.memory_space<vmem>>) attributes {dimension_semantics = [#tpu.dimension_semantics<parallel>, #tpu.dimension_semantics<arbitrary>], iteration_bounds = array<i64: 1, 1>, scalar_prefetch = 0 : i64, scratch_operands = 0 : i64, tpu.core_type = #tpu.core_type<tc>, window_params = [{transform_indices = @transform_0, window_bounds = array<i64: 2, 4, 256>}, {transform_indices = @transform_1, window_bounds = array<i64: 1, 4, 1>}, {transform_indices = @transform_2, window_bounds = array<i64: 1, 4, 4>}]} {
    %c0_i32 = arith.constant 0 : i32
    %0 = arith.cmpi eq, %arg1, %c0_i32 : i32
    %1 = arith.extui %0 : i1 to i32
    %c0_i32_0 = arith.constant 0 : i32
    %2 = arith.cmpi ne, %1, %c0_i32_0 : i32
    scf.if %2 {
      %cst_20 = arith.constant 0.000000e+00 : f32
      %27 = vector.broadcast %cst_20 : f32 to vector<1x4x1xf32>
      %c0_21 = arith.constant 0 : index
      %c0_22 = arith.constant 0 : index
      %c0_23 = arith.constant 0 : index
      %28 = vector.load %arg3[%c0_21, %c0_22, %c0_23] : memref<1x4x1xf32, #tpu.memory_space<vmem>>, vector<1x4x1xf32>
      tpu.vector_store %arg3[%c0_21, %c0_22, %c0_23], %27 {strides = array<i32>} : memref<1x4x1xf32, #tpu.memory_space<vmem>>, vector<1x4x1xf32>,
      %cst_24 = arith.constant 0.000000e+00 : f32
      %29 = vector.broadcast %cst_24 : f32 to vector<1x4x4xf32>
      %c0_25 = arith.constant 0 : index
      %c0_26 = arith.constant 0 : index
      %c0_27 = arith.constant 0 : index
      %30 = vector.load %arg4[%c0_25, %c0_26, %c0_27] : memref<1x4x4xf32, #tpu.memory_space<vmem>>, vector<1x4x4xf32>
      tpu.vector_store %arg4[%c0_25, %c0_26, %c0_27], %29 {strides = array<i32>} : memref<1x4x4xf32, #tpu.memory_space<vmem>>, vector<1x4x4xf32>,
    } else {
    }
    %c0 = arith.constant 0 : index
    %c0_1 = arith.constant 0 : index
    %c0_2 = arith.constant 0 : index
    %3 = vector.load %arg2[%c0, %c0_1, %c0_2] : memref<2x4x256xf32, #tpu.memory_space<vmem>>, vector<1x4x256xf32>
    %4 = vector.shape_cast %3 : vector<1x4x256xf32> to vector<4x256xf32>
    %cst = arith.constant dense<0.000000e+00> : vector<4xf32>
    %5 = vector.multi_reduction <add>, %4, %cst [1] : vector<4x256xf32> to vector<4xf32>
    %6 = vector.shape_cast %5 : vector<4xf32> to vector<4x1xf32>
    %cst_3 = arith.constant dense<0.000000e+00> : vector<4x4xf32>
    %7 = tpu.matmul %4, %4, %cst_3 {dimension_numbers = #tpu.dot_dimension_numbers<[1], [1], [0], [0], [0, 0, 1, 0], [], []>} : vector<4x256xf32>, vector<4x256xf32>, vector<4x4xf32> -> vector<4x4xf32>
    %c1 = arith.constant 1 : index
    %c0_4 = arith.constant 0 : index
    %c0_5 = arith.constant 0 : index
    %8 = vector.load %arg2[%c1, %c0_4, %c0_5] : memref<2x4x256xf32, #tpu.memory_space<vmem>>, vector<1x4x256xf32>
    %9 = vector.shape_cast %8 : vector<1x4x256xf32> to vector<4x256xf32>
    %cst_6 = arith.constant dense<0.000000e+00> : vector<4xf32>
    %10 = vector.multi_reduction <add>, %9, %cst_6 [1] : vector<4x256xf32> to vector<4xf32>
    %11 = vector.shape_cast %10 : vector<4xf32> to vector<4x1xf32>
    %cst_7 = arith.constant dense<0.000000e+00> : vector<4x4xf32>
    %12 = tpu.matmul %9, %9, %cst_7 {dimension_numbers = #tpu.dot_dimension_numbers<[1], [1], [0], [0], [0, 0, 1, 0], [], []>} : vector<4x256xf32>, vector<4x256xf32>, vector<4x4xf32> -> vector<4x4xf32>
    %13 = arith.addf %6, %11 : vector<4x1xf32>
    %14 = arith.addf %7, %12 : vector<4x4xf32>
    %c0_8 = arith.constant 0 : index
    %c0_9 = arith.constant 0 : index
    %c0_10 = arith.constant 0 : index
    %15 = vector.load %arg3[%c0_8, %c0_9, %c0_10] : memref<1x4x1xf32, #tpu.memory_space<vmem>>, vector<1x4x1xf32>
    %16 = vector.shape_cast %15 : vector<1x4x1xf32> to vector<4x1xf32>
    %17 = arith.addf %16, %13 : vector<4x1xf32>
    %c0_11 = arith.constant 0 : index
    %c0_12 = arith.constant 0 : index
    %c0_13 = arith.constant 0 : index
    %18 = vector.load %arg3[%c0_11, %c0_12, %c0_13] : memref<1x4x1xf32, #tpu.memory_space<vmem>>, vector<1x4x1xf32>
    %19 = vector.shape_cast %18 : vector<1x4x1xf32> to vector<4x1xf32>
    %20 = vector.shape_cast %17 : vector<4x1xf32> to vector<1x4x1xf32>
    tpu.vector_store %arg3[%c0_11, %c0_12, %c0_13], %20 {strides = array<i32>} : memref<1x4x1xf32, #tpu.memory_space<vmem>>, vector<1x4x1xf32>,
    %c0_14 = arith.constant 0 : index
    %c0_15 = arith.constant 0 : index
    %c0_16 = arith.constant 0 : index
    %21 = vector.load %arg4[%c0_14, %c0_15, %c0_16] : memref<1x4x4xf32, #tpu.memory_space<vmem>>, vector<1x4x4xf32>
    %22 = vector.shape_cast %21 : vector<1x4x4xf32> to vector<4x4xf32>
    %23 = arith.addf %22, %14 : vector<4x4xf32>
    %c0_17 = arith.constant 0 : index
    %c0_18 = arith.constant 0 : index
    %c0_19 = arith.constant 0 : index
    %24 = vector.load %arg4[%c0_17, %c0_18, %c0_19] : memref<1x4x4xf32, #tpu.memory_space<vmem>>, vector<1x4x4xf32>
    %25 = vector.shape_cast %24 : vector<1x4x4xf32> to vector<4x4xf32>
    %26 = vector.shape_cast %23 : vector<4x4xf32> to vector<1x4x4xf32>
    tpu.vector_store %arg4[%c0_17, %c0_18, %c0_19], %26 {strides = array<i32>} : memref<1x4x4xf32, #tpu.memory_space<vmem>>, vector<1x4x4xf32>,
    return
  }
  func.func @transform_0(%arg0: i32, %arg1: i32) -> (i32, i32, i32) {
    %c0_i32 = arith.constant 0 : i32
    %c0_i32_0 = arith.constant 0 : i32
    return %arg0, %c0_i32, %arg1 : i32, i32, i32
  }
  func.func @transform_1(%arg0: i32, %arg1: i32) -> (i32, i32, i32) {
    %c0_i32 = arith.constant 0 : i32
    %c0_i32_0 = arith.constant 0 : i32
    %c0_i32_1 = arith.constant 0 : i32
    return %arg0, %c0_i32, %c0_i32_0 : i32, i32, i32
  }
  func.func @transform_2(%arg0: i32, %arg1: i32) -> (i32, i32, i32) {
    %c0_i32 = arith.constant 0 : i32
    %c0_i32_0 = arith.constant 0 : i32
    %c0_i32_1 = arith.constant 0 : i32
    return %arg0, %c0_i32, %c0_i32_0 : i32, i32, i32
  }
}

</mosaic_0001>

<bundles_post_ra>
// kernel: tpu_custom_call.1
= control target key start
LH: loop header
LB: loop body
LE: loop exit
PB: predicated region body
PF: predicated region fallthrough
CT: control target
= control target key end

     0   :  { %8 = vsyncpa [#allocation3], 0  ;;  %s285_s0 = inlined_call_operand.hbm [shape: f32[2,4,256], index: 0, kind: input, shape index: {}]   ;;  %s286_s1 = inlined_call_operand.vmem [shape: f32[1,4,1], index: 1, kind: output, shape index: {0}]   ;;  %s287_s2 = inlined_call_operand.hbm [shape: f32[1,4,4], index: 2, kind: output, shape index: {1}]  }
   0x1   :  { %9 = vsyncpa [#allocation4], 0  ;;  %s14_s11 = sshll.u32 %s285_s0, 4  ;;  %s248_s12 = smov [#allocation2]   ;;  %s15_s11 = int_to_ptr.hbm [resolvable:$true] %s14_s11 }
   0x2   :  { %s16_s13 = sshll.u32 %s248_s12, 4  ;;  %s249_s14 = smov 128   ;;  %s17_s13 = int_to_ptr.vmem [resolvable:$true] %s16_s13 }
   0x3   :  { %s250_s15 = smov 8  }
   0x4   :  { %22 = dma.hbm_to_vmem [thread:$0]  %s15_s11, 256, %s17_s13, [#allocation3], %s249_s14, %s249_s14, %s250_s15  }
   0x5   :  { %244 = dma.done.wait [#allocation3], 256  }
   0x6   :  { %245 = vsyncadd [#allocation3], 4294967040  ;;  %v35_v0 = vld [vmem:[#allocation2] sm:$0xff]  ;;  %v49_v1 = vld [vmem:[#allocation2 + $0x8] sm:$0xff]  ;;  %vm42_vm0 = vcmask 1043456   ;;  %vm31_vm1 = vcmask 3072  }
   0x7   :  { %37 = vst [vmem:[#allocation1] ss:$2 sm:$0xff] %v35_v0  ;;  %v251_v20 = vmov 0.0   ;;  %vm33_vm2 = vcmask 27648   ;;  %s252_s21 = smov [#allocation5]   ;;  %s179_s25 = sshll.u32 %s287_s2, 4  ;;  %s180_s25 = int_to_ptr.hbm [resolvable:$true] %s179_s25 }
   0x8   :  { %32 = vst.msk [vmem:[%s286_s1] sm:$0xf] %vm31_vm1, %v251_v20  ;;  %s177_s22 = sshll.u32 %s252_s21, 4  ;;  %s178_s22 = int_to_ptr.vmem [resolvable:$true] %s177_s22 }
   0x9   :  { %34 = vst.msk [vmem:[#allocation5] sm:$0xf] %vm33_vm2, %v251_v20 }
   0xe   :  { %v38_v2 = vld.sshfl [vmem:[#allocation1] sm:$0xff pattern:$0x75316420]  ;;  %v39_v3 = vld.sshfl [vmem:[#allocation1 + $0x8] sm:$0xff pattern:$0x75316420] }
   0xf   :  { %51 = vst [vmem:[#allocation1] ss:$2 sm:$0xff] %v49_v1  ;;  %v43_v6 = vsel %vm42_vm0, %v38_v2, 0.0  ;;  %v44_v7 = vsel %vm42_vm0, %v39_v3, 0.0  ;;  %v162_v23 = vld [vmem:[%s286_s1] sm:$0xf] }
  0x10   :  { %v45_v8 = vadd.f32 %v44_v7, %v43_v6  ;;  %v166_v32 = vld [vmem:[#allocation5] sm:$0xf] }
  0x12   :  { %46 = vadd.xlane.f32.xlu0 %v45_v8 }
  0x16   :  { %v52_v4 = vld.sshfl [vmem:[#allocation1] sm:$0xff pattern:$0x75316420]  ;;  %v53_v5 = vld.sshfl [vmem:[#allocation1 + $0x8] sm:$0xff pattern:$0x75316420] }
  0x17   :  { %61 = vst [vmem:[#allocation1] ss:$2 sm:$0xff] %v49_v1  ;;  %v56_v9 = vsel %vm42_vm0, %v52_v4, 0.0  ;;  %v57_v10 = vsel %vm42_vm0, %v53_v5, 0.0 }
  0x18   :  { %v58_v13 = vadd.f32 %v57_v10, %v56_v9 }
  0x1a   :  { %59 = vadd.xlane.f32.xlu0 %v58_v13 }
  0x1e   :  { %v62_v11 = vld.sshfl [vmem:[#allocation1] sm:$0xff pattern:$0x75316420]  ;;  %v63_v12 = vld.sshfl [vmem:[#allocation1 + $0x8] sm:$0xff pattern:$0x75316420] }
  0x1f   :  { %66 = vst [vmem:[#allocation1] ss:$2 sm:$0xff] %v49_v1 }
  0x26   :  { %v67_v14 = vld.sshfl [vmem:[#allocation1] sm:$0xff pattern:$0x75316420]  ;;  %v68_v15 = vld.sshfl [vmem:[#allocation1 + $0x8] sm:$0xff pattern:$0x75316420] }
  0x27   :  { %112 = vst [vmem:[#allocation1] ss:$2 sm:$0xff] %v35_v0  ;;  %86 = vmatpush.xpose.msra.mxu0 %v67_v14  ;;  %106 = vmatpush.xpose.msra.mxu1 %v68_v15 }
  0x2a   :  { %87 = vmatmul.f32.vlgmr.msra.gmra.mxu0 %v62_v11  ;;  %107 = vmatmul.f32.vlgmr.msra.gmra.mxu1 %v63_v12 }
  0x2e   :  { %v113_v16 = vld.sshfl [vmem:[#allocation1] sm:$0xff pattern:$0x75316420]  ;;  %v114_v17 = vld.sshfl [vmem:[#allocation1 + $0x8] sm:$0xff pattern:$0x75316420] }
  0x2f   :  { %117 = vst [vmem:[#allocation1] ss:$2 sm:$0xff] %v35_v0 }
  0x36   :  { %v118_v18 = vld.sshfl [vmem:[#allocation1] sm:$0xff pattern:$0x75316420]  ;;  %v119_v19 = vld.sshfl [vmem:[#allocation1 + $0x8] sm:$0xff pattern:$0x75316420] }
  0x37   :  { %137 = vmatpush.xpose.msra.mxu2 %v118_v18  ;;  %157 = vmatpush.xpose.msra.mxu3 %v119_v19 }
  0x3a   :  { %138 = vmatmul.f32.vlgmr.msra.gmra.mxu2 %v113_v16  ;;  %158 = vmatmul.f32.vlgmr.msra.gmra.mxu3 %v114_v17 }
  0x85   :  { %v47_v21 = vpop.xlane.xlu0 %46 }
  0x8d   :  { %v60_v22 = vpop.xlane.xlu0 %59 }
  0x8e   :  { %v111_v24 = vadd.f32 %v60_v22, %v47_v21 }
  0x90   :  { %v163_v25 = vadd.f32 %v162_v23, %v111_v24 }
  0x92   :  { %165 = vst.msk [vmem:[%s286_s1] sm:$0xf] %vm31_vm1, %v163_v25 }
  0xa7   :  { %v88_v26 = vpop.f32.mrf.mxu0  ;;  %v108_v27 = vpop.f32.mrf.mxu1 }
  0xa8   :  { %v109_v28 = vadd.f32 %v108_v27, %v88_v26 }
  0xbd   :  { %v139_v29 = vpop.f32.mrf.mxu2  ;;  %v159_v30 = vpop.f32.mrf.mxu3 }
  0xbe   :  { %v140_v31 = vadd.f32 %v139_v29, %v109_v28 }
  0xc0   :  { %v160_v33 = vadd.f32 %v159_v30, %v140_v31 }
  0xc2   :  { %v167_v34 = vadd.f32 %v166_v32, %v160_v33 }
  0xc4   :  { %169 = vst.msk [vmem:[#allocation5] sm:$0xf] %vm33_vm2, %v167_v34 }
  0xc5   :  { %182 = dma.vmem_to_hbm [thread:$0]  %s178_s22, 64, %s180_s25, [#allocation4]  }
  0xc6   :  { %246 = dma.done.wait [#allocation4], 64  }
  0xc7   :  { %247 = vsyncadd [#allocation4], 4294967232 }
  0xc8   :  { %189 = vsyncpa [#allocation3], 1 }
  0xc9   :  { %190 = vsyncpa [#allocation4], 1 }

</bundles_post_ra>
